<compile_context>
chip_gen: v6e
topology: v6e:2x2x1
jax: 0.10.0
libtpu: 0.0.40
codegen_flags: <defaults>
</compile_context>

<pallas_src>
import jax
import jax.numpy as jnp
from jax.experimental import pallas as pl
from jax.experimental.pallas import tpu as pltpu


# ---------------------------------------------------------------------------
# Kernels
# ---------------------------------------------------------------------------

def _contiguous_slice_kernel(table_ref, out_ref):
    """Fast path: position_ids == arange(seq_len).

    Whole embedding table is resident in VMEM; emit one dense
    (seq_len, emb_dim) store (static slice of the table -> zero-cost view).
    """
    seq_len = out_ref.shape[0]
    out_ref[...] = table_ref[:seq_len, :]


def _gather_rows_kernel(ids_ref, table_ref, out_ref):
    """Fallback path: arbitrary position_ids.

    ids live in SMEM (scalar prefetch), the whole table lives in VMEM, and all
    rows are gathered inside ONE grid step, so there is no per-row grid/DMA
    setup overhead. Row copies are VMEM->VMEM (1, emb_dim) moves.
    """
    seq_len = out_ref.shape[0]
    # Static trip count (seq_len is small for this module) -> unrolled at trace
    # time; each iteration is a dynamic-sublane read + static-sublane write.
    for i in range(seq_len):
        idx = ids_ref[i]
        out_ref[pl.ds(i, 1), :] = table_ref[pl.ds(idx, 1), :]


# ---------------------------------------------------------------------------
# Wrappers
# ---------------------------------------------------------------------------

def _positional_encoding_contiguous(pe_weight, seq_len):
    """pe_weight[:seq_len] via a single-step Pallas copy (table in VMEM)."""
    max_pos, emb_dim = pe_weight.shape
    return pl.pallas_call(
        _contiguous_slice_kernel,
        out_shape=jax.ShapeDtypeStruct((seq_len, emb_dim), pe_weight.dtype),
        # Whole arrays (no grid): both blocks equal the full array dims, so the
        # (8, 128) divisibility rule never triggers and stores are lane-dense.
        in_specs=[pl.BlockSpec(memory_space=pltpu.MemorySpace.VMEM)],
        out_specs=pl.BlockSpec(memory_space=pltpu.MemorySpace.VMEM),
    )(pe_weight)


def _positional_encoding_gather(pe_weight, position_ids_flat):
    """pe_weight[position_ids] via one grid step, ids in SMEM, table in VMEM."""
    max_pos, emb_dim = pe_weight.shape
    seq_len = position_ids_flat.shape[0]

    grid_spec = pltpu.PrefetchScalarGridSpec(
        num_scalar_prefetch=1,          # position_ids -> SMEM
        grid=(1,),                      # single step: no per-row overhead
        in_specs=[
            # Whole table resident in VMEM for the one step.
            pl.BlockSpec((max_pos, emb_dim), lambda i, ids: (0, 0)),
        ],
        # Output block == full output array (always legal, dense store path).
        out_specs=pl.BlockSpec((seq_len, emb_dim), lambda i, ids: (0, 0)),
    )

    return pl.pallas_call(
        _gather_rows_kernel,
        out_shape=jax.ShapeDtypeStruct((seq_len, emb_dim), pe_weight.dtype),
        grid_spec=grid_spec,
        compiler_params=pltpu.CompilerParams(
            dimension_semantics=("arbitrary",),
        ),
    )(position_ids_flat, pe_weight)


class LearnedPositionalEncodingJAX:
    """Mirror of the PyTorch LearnedPositionalEncoding, deterministic init."""

    def __init__(self, max_position_embeddings, embedding_dim, seq_length, key):
        # nn.Embedding default init: N(0, 1).
        self.pe_weight = jax.random.normal(
            key, (max_position_embeddings, embedding_dim), dtype=jnp.float32
        )
        self.max_position_embeddings = max_position_embeddings
        self.embedding_dim = embedding_dim
        self.seq_length = seq_length

    def __call__(self, x, position_ids=None):
        # x is accepted for API parity; its values are unused by forward().
        del x
        if position_ids is None:
            # Default ids are arange(seq_length): contiguous slice fast path.
            out = _positional_encoding_contiguous(self.pe_weight, self.seq_length)
            return out[None, :, :]                      # (1, seq, dim)

        ids = jnp.asarray(position_ids, jnp.int32)
        lead_shape = ids.shape
        flat = jnp.clip(ids.reshape(-1), 0, self.max_position_embeddings - 1)
        out = _positional_encoding_gather(self.pe_weight, flat)
        return out.reshape(lead_shape + (self.embedding_dim,))


if __name__ == "__main__":
    key = jax.random.PRNGKey(0)
    k_emb, k_x = jax.random.split(key)

    max_position_embeddings = 16
    embedding_dim = 128
    seq_length = 8
    batch = 2

    module = LearnedPositionalEncodingJAX(
        max_position_embeddings, embedding_dim, seq_length, k_emb
    )

    # x is only a pass-through argument in the PyTorch forward (values unused).
    x = jax.random.normal(k_x, (batch, seq_length, embedding_dim), dtype=jnp.float32)

    # --- default path: position_ids == arange(seq_length) ------------------
    out = jax.block_until_ready(module(x))
    ref = module.pe_weight[:seq_length][None, :, :]
    assert out.shape == (1, seq_length, embedding_dim), out.shape
    assert out.dtype == jnp.float32
    assert jnp.allclose(out, ref), "contiguous path mismatch vs reference"

    # --- explicit (non-contiguous) position_ids path ------------------------
    explicit_ids = jnp.array([[7, 3, 0, 1, 15, 2, 9, 4]], dtype=jnp.int32)
    out2 = jax.block_until_ready(module(x, explicit_ids))
    ref2 = module.pe_weight[explicit_ids]
    assert out2.shape == (1, seq_length, embedding_dim), out2.shape
    assert jnp.allclose(out2, ref2), "gather path mismatch vs reference"

    print("KERNEL_OK")
</pallas_src>

<mosaic_0001>
module attributes {stable_mosaic.version = 11 : i64} {
  func.func @_contiguous_slice_kernel(%arg0: memref<16x128xf32, #tpu.memory_space<vmem>>, %arg1: memref<8x128xf32, #tpu.memory_space<vmem>>) attributes {dimension_semantics = [], scalar_prefetch = 0 : i64, scratch_operands = 0 : i64, tpu.core_type = #tpu.core_type<tc>} {
    %c0 = arith.constant 0 : index
    %c0_0 = arith.constant 0 : index
    %0 = vector.load %arg0[%c0, %c0_0] : memref<16x128xf32, #tpu.memory_space<vmem>>, vector<8x128xf32>
    %c0_1 = arith.constant 0 : index
    %c0_2 = arith.constant 0 : index
    %1 = vector.load %arg1[%c0_1, %c0_2] : memref<8x128xf32, #tpu.memory_space<vmem>>, vector<8x128xf32>
    tpu.vector_store %arg1[%c0_1, %c0_2], %0 {strides = array<i32>} : memref<8x128xf32, #tpu.memory_space<vmem>>, vector<8x128xf32>,
    return
  }
}

</mosaic_0001>

<bundles_post_ra>
// kernel: tpu_custom_call.1
= control target key start
LH: loop header
LB: loop body
LE: loop exit
PB: predicated region body
PF: predicated region fallthrough
CT: control target
= control target key end

     0   :  { %6 = vsyncpa [#allocation3], 0  ;;  %s108_s0 = inlined_call_operand.hbm [shape: f32[16,128], index: 0, kind: input, shape index: {}]   ;;  %s109_s1 = inlined_call_operand.hbm [shape: f32[8,128], index: 1, kind: output, shape index: {}]  }
   0x1   :  { %7 = vsyncpa [#allocation4], 0  ;;  %s88_s6 = smov [#allocation2]  }
   0x2   :  { %s13_s7 = sshll.u32 %s88_s6, 4  ;;  %s14_s7 = int_to_ptr.vmem [resolvable:$true] %s13_s7 }
   0x3   :  { %s52_s8 = scalar_lea.vmem %s14_s7, 256  ;;  %p57_p1 = scmp.lt.s32.totalorder %s14_s7, %s14_s7 }
   0x4   :  { %p53_p0 = scmp.ne.s32.totalorder %s14_s7, %s52_s8  ;;  %p58_p2 = scmp.lt.s32.totalorder %s52_s8, %s52_s8 }
   0x6   :  { %p59_p3 = por %p58_p2, %p57_p1 }
   0x8   :  { %p60_p4 = pnand %p59_p3, %p53_p0 }
   0xa   :  { %63 = shalt.err (!%p60_p4)
}
   0xb   :  { %s89_s9 = smov 128   ;;  %s90_s10 = smov 8  }
   0xc   :  { %19 = dma.hbm_to_vmem [thread:$0]  %s108_s0, 256, %s14_s7, [#allocation3], %s89_s9, %s89_s9, %s90_s10  }
   0xd   :  { %84 = dma.done.wait [#allocation3], 256  }
   0xe   :  { %85 = vsyncadd [#allocation3], 4294967040  ;;  %s91_s13 = smov [#allocation5]   ;;  %v23_v0 = vld [vmem:[#allocation2] sm:$0xff] }
   0xf   :  { %s31_s14 = sshll.u32 %s91_s13, 4  ;;  %24 = vst [vmem:[#allocation5] sm:$0xff] %v23_v0  ;;  %s32_s14 = int_to_ptr.vmem [resolvable:$true] %s31_s14 }
  0x10   :  { %s64_s15 = scalar_lea.vmem %s32_s14, 128  ;;  %p69_p6 = scmp.lt.s32.totalorder %s32_s14, %s32_s14 }
  0x11   :  { %p65_p5 = scmp.ne.s32.totalorder %s32_s14, %s64_s15  ;;  %p70_p7 = scmp.lt.s32.totalorder %s64_s15, %s64_s15 }
  0x13   :  { %p71_p8 = por %p70_p7, %p69_p6 }
  0x15   :  { %p72_p9 = pnand %p71_p8, %p65_p5 }
  0x17   :  { %75 = shalt.err (!%p72_p9)
}
  0x18   :  { %34 = dma.vmem_to_hbm [thread:$0]  %s32_s14, 128, %s109_s1, [#allocation4]  }
  0x19   :  { %86 = dma.done.wait [#allocation4], 128  }
  0x1a   :  { %87 = vsyncadd [#allocation4], 4294967168 }
  0x1b   :  { %38 = vsyncpa [#allocation3], 1 }
  0x1c   :  { %39 = vsyncpa [#allocation4], 1 }

</bundles_post_ra>
